<compile_context>
chip_gen: v5e
topology: v5e:2x2
jax: 0.10.0
libtpu: 0.0.40
codegen_flags: <defaults>
</compile_context>

<pallas_src>
import functools

import jax
import jax.numpy as jnp
from jax.experimental import pallas as pl
from jax.experimental.pallas import tpu as pltpu


def qnet_kernel(obs_ref, w1_ref, b1_ref, w2_ref, b2_ref, w3_ref, b3_ref,
                out_ref, *, num_agents):
    """One kernel invocation computes all agents' Q-values.

    obs_ref: (B, A, n_obs)      w*_ref: (A, fan_in, fan_out)   b*_ref: (A, 1, fan_out)
    out_ref: (B, A * n_act)  -- lane-packed output slab.
    """
    obs = obs_ref[...]                                    # (B, A, n_obs)
    qs = []
    for a in range(num_agents):                           # static unroll (A is tiny)
        x = obs[:, a, :]                                  # (B, n_obs)
        h = jnp.dot(x, w1_ref[a],
                    preferred_element_type=jnp.float32) + b1_ref[a]
        h = jnp.maximum(h, 0.0)                           # ReLU
        h = jnp.dot(h, w2_ref[a],
                    preferred_element_type=jnp.float32) + b2_ref[a]
        h = jnp.maximum(h, 0.0)                           # ReLU
        q = jnp.dot(h, w3_ref[a],
                    preferred_element_type=jnp.float32) + b3_ref[a]
        qs.append(q)                                      # (B, n_act)
    # One lane-dense store instead of A narrow masked stores.
    out_ref[...] = jnp.concatenate(qs, axis=-1).astype(out_ref.dtype)


@jax.jit
def qnet_forward(obs, w1, b1, w2, b2, w3, b3):
    """obs: (B, A, n_obs) float32 -> (B, A, n_act) float32."""
    B, A, n_obs = obs.shape
    h1 = w1.shape[2]
    h2 = w2.shape[2]
    n_act = w3.shape[2]

    flops = 2 * B * A * (n_obs * h1 + h1 * h2 + h2 * n_act)
    bytes_accessed = 4 * (obs.size + w1.size + b1.size + w2.size + b2.size
                          + w3.size + b3.size + B * A * n_act)

    vmem_spec = pl.BlockSpec(memory_space=pltpu.MemorySpace.VMEM)

    out_flat = pl.pallas_call(
        functools.partial(qnet_kernel, num_agents=A),
        out_shape=jax.ShapeDtypeStruct((B, A * n_act), jnp.float32),
        in_specs=[vmem_spec] * 7,
        out_specs=vmem_spec,
        cost_estimate=pl.CostEstimate(flops=flops, transcendentals=0,
                                      bytes_accessed=bytes_accessed),
    )(obs, w1, b1, w2, b2, w3, b3)

    # Free reshape (contiguous minor dims): (B, A*n_act) -> (B, A, n_act).
    return out_flat.reshape(B, A, n_act)


def init_params(key, num_agents, n_obs, n_act, h1=128, h2=64):
    """Deterministic init mirroring nn.Linear default (uniform +-1/sqrt(fan_in)),
    with per-agent weights stacked on a leading agent axis."""
    def linear(k, a, fan_in, fan_out):
        kw, kb = jax.random.split(k)
        bound = 1.0 / jnp.sqrt(fan_in)
        w = jax.random.uniform(kw, (a, fan_in, fan_out), jnp.float32,
                               -bound, bound)
        b = jax.random.uniform(kb, (a, 1, fan_out), jnp.float32,
                               -bound, bound)
        return w, b

    k1, k2, k3 = jax.random.split(key, 3)
    w1, b1 = linear(k1, num_agents, n_obs, h1)
    w2, b2 = linear(k2, num_agents, h1, h2)
    w3, b3 = linear(k3, num_agents, h2, n_act)
    return w1, b1, w2, b2, w3, b3


def qnet_reference(obs, w1, b1, w2, b2, w3, b3):
    """Pure-JAX reference of the PyTorch forward."""
    outs = []
    A = obs.shape[1]
    for a in range(A):
        x = obs[:, a, :]
        h = jnp.maximum(x @ w1[a] + b1[a], 0.0)
        h = jnp.maximum(h @ w2[a] + b2[a], 0.0)
        outs.append((h @ w3[a] + b3[a])[:, None, :])
    return jnp.concatenate(outs, axis=1)


if __name__ == "__main__":
    B, A, N_OBS, N_ACT = 8, 2, 16, 4   # small shapes consistent with QNet

    key = jax.random.PRNGKey(0)
    k_obs, k_par = jax.random.split(key)
    obs = jax.random.normal(k_obs, (B, A, N_OBS), jnp.float32)
    params = init_params(k_par, A, N_OBS, N_ACT)

    q = qnet_forward(obs, *params)
    q = jax.block_until_ready(q)

    q_ref = qnet_reference(obs, *params)
    assert q.shape == (B, A, N_ACT)
    assert jnp.allclose(q, q_ref, atol=1e-5, rtol=1e-5)

    print("KERNEL_OK")
</pallas_src>

<mosaic_0001>
module attributes {stable_mosaic.version = 11 : i64} {
  func.func @qnet_kernel(%arg0: memref<8x2x16xf32, #tpu.memory_space<vmem>>, %arg1: memref<2x16x128xf32, #tpu.memory_space<vmem>>, %arg2: memref<2x1x128xf32, #tpu.memory_space<vmem>>, %arg3: memref<2x128x64xf32, #tpu.memory_space<vmem>>, %arg4: memref<2x1x64xf32, #tpu.memory_space<vmem>>, %arg5: memref<2x64x4xf32, #tpu.memory_space<vmem>>, %arg6: memref<2x1x4xf32, #tpu.memory_space<vmem>>, %arg7: memref<8x8xf32, #tpu.memory_space<vmem>>) attributes {dimension_semantics = [], scalar_prefetch = 0 : i64, scratch_operands = 0 : i64, tpu.core_type = #tpu.core_type<tc>} {
    %c0 = arith.constant 0 : index
    %c0_0 = arith.constant 0 : index
    %c0_1 = arith.constant 0 : index
    %0 = vector.load %arg0[%c0, %c0_0, %c0_1] : memref<8x2x16xf32, #tpu.memory_space<vmem>>, vector<8x2x16xf32>
    %1 = vector.extract_strided_slice %0 {offsets = [0, 0, 0], sizes = [8, 1, 16], strides = [1, 1, 1]} : vector<8x2x16xf32> to vector<8x1x16xf32>
    %2 = vector.shape_cast %1 : vector<8x1x16xf32> to vector<8x16xf32>
    %c0_2 = arith.constant 0 : index
    %c0_3 = arith.constant 0 : index
    %c0_4 = arith.constant 0 : index
    %3 = vector.load %arg1[%c0_2, %c0_3, %c0_4] : memref<2x16x128xf32, #tpu.memory_space<vmem>>, vector<1x16x128xf32>
    %4 = vector.shape_cast %3 : vector<1x16x128xf32> to vector<16x128xf32>
    %cst = arith.constant dense<0.000000e+00> : vector<8x128xf32>
    %5 = tpu.matmul %2, %4, %cst {dimension_numbers = #tpu.dot_dimension_numbers<[1], [0], [0], [1], [0, 0, 1, 1], [], []>} : vector<8x16xf32>, vector<16x128xf32>, vector<8x128xf32> -> vector<8x128xf32>
    %c0_5 = arith.constant 0 : index
    %c0_6 = arith.constant 0 : index
    %c0_7 = arith.constant 0 : index
    %6 = vector.load %arg2[%c0_5, %c0_6, %c0_7] : memref<2x1x128xf32, #tpu.memory_space<vmem>>, vector<1x1x128xf32>
    %7 = vector.shape_cast %6 : vector<1x1x128xf32> to vector<1x128xf32>
    %8 = vector.broadcast %7 : vector<1x128xf32> to vector<8x128xf32>
    %9 = arith.addf %5, %8 : vector<8x128xf32>
    %cst_8 = arith.constant 0.000000e+00 : f32
    %10 = vector.broadcast %cst_8 : f32 to vector<8x128xf32>
    %11 = arith.maximumf %9, %10 : vector<8x128xf32>
    %c0_9 = arith.constant 0 : index
    %c0_10 = arith.constant 0 : index
    %c0_11 = arith.constant 0 : index
    %12 = vector.load %arg3[%c0_9, %c0_10, %c0_11] : memref<2x128x64xf32, #tpu.memory_space<vmem>>, vector<1x128x64xf32>
    %13 = vector.shape_cast %12 : vector<1x128x64xf32> to vector<128x64xf32>
    %cst_12 = arith.constant dense<0.000000e+00> : vector<8x64xf32>
    %14 = tpu.matmul %11, %13, %cst_12 {dimension_numbers = #tpu.dot_dimension_numbers<[1], [0], [0], [1], [0, 0, 1, 1], [], []>} : vector<8x128xf32>, vector<128x64xf32>, vector<8x64xf32> -> vector<8x64xf32>
    %c0_13 = arith.constant 0 : index
    %c0_14 = arith.constant 0 : index
    %c0_15 = arith.constant 0 : index
    %15 = vector.load %arg4[%c0_13, %c0_14, %c0_15] : memref<2x1x64xf32, #tpu.memory_space<vmem>>, vector<1x1x64xf32>
    %16 = vector.shape_cast %15 : vector<1x1x64xf32> to vector<1x64xf32>
    %17 = vector.broadcast %16 : vector<1x64xf32> to vector<8x64xf32>
    %18 = arith.addf %14, %17 : vector<8x64xf32>
    %cst_16 = arith.constant 0.000000e+00 : f32
    %19 = vector.broadcast %cst_16 : f32 to vector<8x64xf32>
    %20 = arith.maximumf %18, %19 : vector<8x64xf32>
    %c0_17 = arith.constant 0 : index
    %c0_18 = arith.constant 0 : index
    %c0_19 = arith.constant 0 : index
    %21 = vector.load %arg5[%c0_17, %c0_18, %c0_19] : memref<2x64x4xf32, #tpu.memory_space<vmem>>, vector<1x64x4xf32>
    %22 = vector.shape_cast %21 : vector<1x64x4xf32> to vector<64x4xf32>
    %cst_20 = arith.constant dense<0.000000e+00> : vector<8x4xf32>
    %23 = tpu.matmul %20, %22, %cst_20 {dimension_numbers = #tpu.dot_dimension_numbers<[1], [0], [0], [1], [0, 0, 1, 1], [], []>} : vector<8x64xf32>, vector<64x4xf32>, vector<8x4xf32> -> vector<8x4xf32>
    %c0_21 = arith.constant 0 : index
    %c0_22 = arith.constant 0 : index
    %c0_23 = arith.constant 0 : index
    %24 = vector.load %arg6[%c0_21, %c0_22, %c0_23] : memref<2x1x4xf32, #tpu.memory_space<vmem>>, vector<1x1x4xf32>
    %25 = vector.shape_cast %24 : vector<1x1x4xf32> to vector<1x4xf32>
    %26 = vector.broadcast %25 : vector<1x4xf32> to vector<8x4xf32>
    %27 = arith.addf %23, %26 : vector<8x4xf32>
    %28 = vector.extract_strided_slice %0 {offsets = [0, 1, 0], sizes = [8, 1, 16], strides = [1, 1, 1]} : vector<8x2x16xf32> to vector<8x1x16xf32>
    %29 = vector.shape_cast %28 : vector<8x1x16xf32> to vector<8x16xf32>
    %c1 = arith.constant 1 : index
    %c0_24 = arith.constant 0 : index
    %c0_25 = arith.constant 0 : index
    %30 = vector.load %arg1[%c1, %c0_24, %c0_25] : memref<2x16x128xf32, #tpu.memory_space<vmem>>, vector<1x16x128xf32>
    %31 = vector.shape_cast %30 : vector<1x16x128xf32> to vector<16x128xf32>
    %cst_26 = arith.constant dense<0.000000e+00> : vector<8x128xf32>
    %32 = tpu.matmul %29, %31, %cst_26 {dimension_numbers = #tpu.dot_dimension_numbers<[1], [0], [0], [1], [0, 0, 1, 1], [], []>} : vector<8x16xf32>, vector<16x128xf32>, vector<8x128xf32> -> vector<8x128xf32>
    %c1_27 = arith.constant 1 : index
    %c0_28 = arith.constant 0 : index
    %c0_29 = arith.constant 0 : index
    %33 = vector.load %arg2[%c1_27, %c0_28, %c0_29] : memref<2x1x128xf32, #tpu.memory_space<vmem>>, vector<1x1x128xf32>
    %34 = vector.shape_cast %33 : vector<1x1x128xf32> to vector<1x128xf32>
    %35 = vector.broadcast %34 : vector<1x128xf32> to vector<8x128xf32>
    %36 = arith.addf %32, %35 : vector<8x128xf32>
    %cst_30 = arith.constant 0.000000e+00 : f32
    %37 = vector.broadcast %cst_30 : f32 to vector<8x128xf32>
    %38 = arith.maximumf %36, %37 : vector<8x128xf32>
    %c1_31 = arith.constant 1 : index
    %c0_32 = arith.constant 0 : index
    %c0_33 = arith.constant 0 : index
    %39 = vector.load %arg3[%c1_31, %c0_32, %c0_33] : memref<2x128x64xf32, #tpu.memory_space<vmem>>, vector<1x128x64xf32>
    %40 = vector.shape_cast %39 : vector<1x128x64xf32> to vector<128x64xf32>
    %cst_34 = arith.constant dense<0.000000e+00> : vector<8x64xf32>
    %41 = tpu.matmul %38, %40, %cst_34 {dimension_numbers = #tpu.dot_dimension_numbers<[1], [0], [0], [1], [0, 0, 1, 1], [], []>} : vector<8x128xf32>, vector<128x64xf32>, vector<8x64xf32> -> vector<8x64xf32>
    %c1_35 = arith.constant 1 : index
    %c0_36 = arith.constant 0 : index
    %c0_37 = arith.constant 0 : index
    %42 = vector.load %arg4[%c1_35, %c0_36, %c0_37] : memref<2x1x64xf32, #tpu.memory_space<vmem>>, vector<1x1x64xf32>
    %43 = vector.shape_cast %42 : vector<1x1x64xf32> to vector<1x64xf32>
    %44 = vector.broadcast %43 : vector<1x64xf32> to vector<8x64xf32>
    %45 = arith.addf %41, %44 : vector<8x64xf32>
    %cst_38 = arith.constant 0.000000e+00 : f32
    %46 = vector.broadcast %cst_38 : f32 to vector<8x64xf32>
    %47 = arith.maximumf %45, %46 : vector<8x64xf32>
    %c1_39 = arith.constant 1 : index
    %c0_40 = arith.constant 0 : index
    %c0_41 = arith.constant 0 : index
    %48 = vector.load %arg5[%c1_39, %c0_40, %c0_41] : memref<2x64x4xf32, #tpu.memory_space<vmem>>, vector<1x64x4xf32>
    %49 = vector.shape_cast %48 : vector<1x64x4xf32> to vector<64x4xf32>
    %cst_42 = arith.constant dense<0.000000e+00> : vector<8x4xf32>
    %50 = tpu.matmul %47, %49, %cst_42 {dimension_numbers = #tpu.dot_dimension_numbers<[1], [0], [0], [1], [0, 0, 1, 1], [], []>} : vector<8x64xf32>, vector<64x4xf32>, vector<8x4xf32> -> vector<8x4xf32>
    %c1_43 = arith.constant 1 : index
    %c0_44 = arith.constant 0 : index
    %c0_45 = arith.constant 0 : index
    %51 = vector.load %arg6[%c1_43, %c0_44, %c0_45] : memref<2x1x4xf32, #tpu.memory_space<vmem>>, vector<1x1x4xf32>
    %52 = vector.shape_cast %51 : vector<1x1x4xf32> to vector<1x4xf32>
    %53 = vector.broadcast %52 : vector<1x4xf32> to vector<8x4xf32>
    %54 = arith.addf %50, %53 : vector<8x4xf32>
    %55 = tpu.concatenate %27, %54 in 1 : vector<8x4xf32>, vector<8x4xf32> -> vector<8x8xf32>
    %c0_46 = arith.constant 0 : index
    %c0_47 = arith.constant 0 : index
    %56 = vector.load %arg7[%c0_46, %c0_47] : memref<8x8xf32, #tpu.memory_space<vmem>>, vector<8x8xf32>
    tpu.vector_store %arg7[%c0_46, %c0_47], %55 {strides = array<i32>} : memref<8x8xf32, #tpu.memory_space<vmem>>, vector<8x8xf32>,
    return
  }
}

</mosaic_0001>

<bundles_post_ra>
// kernel: qnet_forward.1
= control target key start
LH: loop header
LB: loop body
LE: loop exit
PB: predicated region body
PF: predicated region fallthrough
CT: control target
= control target key end

     0   :  { %vm49_vm0 = vcmask 1041409   ;;  %vm52_vm1 = vcmask 1042434   ;;  %vm55_vm2 = vcmask 1043459   ;;  %vm58_vm3 = vcmask 1044484   ;;  %s605_s1 = inlined_call_operand.vmem [shape: f32[2,16,128], index: 1, kind: input, shape index: {}]   ;;  %s606_s0 = inlined_call_operand.vmem [shape: f32[8,2,16], index: 0, kind: input, shape index: {}]   ;;  %s607_s3 = inlined_call_operand.vmem [shape: f32[2,128,64], index: 3, kind: input, shape index: {}]   ;;  %s608_s2 = inlined_call_operand.vmem [shape: f32[2,1,128], index: 2, kind: input, shape index: {}]   ;;  %s609_s4 = inlined_call_operand.vmem [shape: f32[2,1,64], index: 4, kind: input, shape index: {}]   ;;  %s610_s5 = inlined_call_operand.vmem [shape: f32[2,64,4], index: 5, kind: input, shape index: {}]   ;;  %s611_s6 = inlined_call_operand.vmem [shape: f32[2,1,4], index: 6, kind: input, shape index: {}]   ;;  %s612_s7 = inlined_call_operand.vmem [shape: f32[8,8], index: 7, kind: output, shape index: {}]  }
   0x1   :  { %v310_v0 = vld [vmem:[%s605_s1 + $0x18] sm:$0xff]  ;;  %v309_v1 = vld [vmem:[%s605_s1 + $0x10] sm:$0xff]  ;;  %v26_v2 = vld [vmem:[%s606_s0] sm:$0x3]  ;;  %vm61_vm4 = vcmask 1045509   ;;  %vm64_vm5 = vcmask 1046534  }
   0x2   :  { %208 = vmatpush.msra.mxu3 %v310_v0  ;;  %v27_v3 = vld [vmem:[%s606_s0 + $0x2] sm:$0x3]  ;;  %v28_v4 = vld [vmem:[%s606_s0 + $0x4] sm:$0x3]  ;;  %v29_v5 = vld [vmem:[%s606_s0 + $0x6] sm:$0x3] }
   0x3   :  { %v30_v6 = vld [vmem:[%s606_s0 + $0x8] sm:$0x3]  ;;  %v31_v7 = vld [vmem:[%s606_s0 + $0xa] sm:$0x3]  ;;  %v32_v8 = vld [vmem:[%s606_s0 + $0xc] sm:$0x3] }
   0x4   :  { %209 = vmatpush.msra.mxu3 %v309_v1  ;;  %v33_v9 = vld [vmem:[%s606_s0 + $0xe] sm:$0x3]  ;;  %v48_v10 = vrot.slane %v27_v3, 7  ;;  %v178_v11 = vrot.slane %v26_v2, 1  ;;  %v180_v12 = vrot.slane %v28_v4, 7  ;;  %v182_v13 = vrot.slane %v29_v5, 6 }
   0x5   :  { %v184_v14 = vrot.slane %v30_v6, 5  ;;  %v328_v15 = vld [vmem:[%s607_s3 + $0xf8] sm:$0xff]  ;;  %v327_v16 = vld [vmem:[%s607_s3 + $0xf0] sm:$0xff]  ;;  %v186_v18 = vrot.slane %v31_v7, 4  ;;  %v188_v19 = vrot.slane %v32_v8, 3  ;;  %v35_v20 = vld [vmem:[%s605_s1 + $0x8] sm:$0xff] }
   0x6   :  { %v179_v17 = vsel %vm49_vm0, %v27_v3, %v178_v11  ;;  %237 = vmatpush.msra.mxu0 %v328_v15  ;;  %v50_v21 = vsel %vm49_vm0, %v48_v10, %v26_v2  ;;  %v326_v23 = vld [vmem:[%s607_s3 + $0xe8] sm:$0xff]  ;;  %86 = vmatpush.msra.mxu2 %v35_v20  ;;  %v34_v24 = vld [vmem:[%s605_s1] sm:$0xff]  ;;  %v51_v25 = vrot.slane %v28_v4, 6  ;;  %v54_v26 = vrot.slane %v29_v5, 5  ;;  %v324_v39 = vld [vmem:[%s607_s3 + $0xd8] sm:$0xff] }
   0x7   :  { %v181_v22 = vsel %vm52_vm1, %v180_v12, %v179_v17  ;;  %v57_v27 = vrot.slane %v30_v6, 4  ;;  %v190_v29 = vrot.slane %v33_v9, 2  ;;  %v60_v30 = vrot.slane %v31_v7, 3  ;;  %v325_v32 = vld [vmem:[%s607_s3 + $0xe0] sm:$0xff]  ;;  %v323_v44 = vld [vmem:[%s607_s3 + $0xd0] sm:$0xff]  ;;  %v322_v46 = vld [vmem:[%s607_s3 + $0xc8] sm:$0xff] }
   0x8   :  { %v183_v28 = vsel %vm55_vm2, %v182_v13, %v181_v22  ;;  %238 = vmatpush.msra.mxu0 %v327_v16  ;;  %vm67_vm6 = vcmask 1047559   ;;  %87 = vmatpush.msra.mxu2 %v34_v24  ;;  %v53_v33 = vsel %vm52_vm1, %v51_v25, %v50_v21  ;;  %v63_v34 = vrot.slane %v32_v8, 2  ;;  %v321_v47 = vld [vmem:[%s607_s3 + $0xc0] sm:$0xff]  ;;  %v320_v48 = vld [vmem:[%s607_s3 + $0xb8] sm:$0xff]  ;;  %v319_v49 = vld [vmem:[%s607_s3 + $0xb0] sm:$0xff] }
   0x9   :  { %v185_v31 = vsel %vm58_vm3, %v184_v14, %v183_v28  ;;  %vm69_vm7 = vcmask 130048   ;;  %v56_v36 = vsel %vm55_vm2, %v54_v26, %v53_v33  ;;  %v66_v37 = vrot.slane %v33_v9, 1  ;;  %v318_v50 = vld [vmem:[%s607_s3 + $0xa8] sm:$0xff]  ;;  %v317_v51 = vld [vmem:[%s607_s3 + $0xa0] sm:$0xff]  ;;  %v316_v52 = vld [vmem:[%s607_s3 + $0x98] sm:$0xff] }
   0xa   :  { %v187_v35 = vsel %vm61_vm4, %v186_v18, %v185_v31  ;;  %239 = vmatpush.msra.mxu0 %v326_v23  ;;  %v59_v40 = vsel %vm58_vm3, %v57_v27, %v56_v36  ;;  %v315_v53 = vld [vmem:[%s607_s3 + $0x90] sm:$0xff]  ;;  %v314_v54 = vld [vmem:[%s607_s3 + $0x88] sm:$0xff]  ;;  %v313_v55 = vld [vmem:[%s607_s3 + $0x80] sm:$0xff]  ;;  %vm146_vm8 = vcmask 523264   ;;  %vm299_vm9 = vcmask 31744  }
   0xb   :  { %v189_v38 = vsel %vm64_vm5, %v188_v19, %v187_v35  ;;  %v62_v42 = vsel %vm61_vm4, %v60_v30, %v59_v40  ;;  %v108_v56 = vld [vmem:[%s607_s3 + $0x78] sm:$0xff]  ;;  %v107_v57 = vld [vmem:[%s607_s3 + $0x70] sm:$0xff]  ;;  %v106_v58 = vld [vmem:[%s607_s3 + $0x68] sm:$0xff]  ;;  %vm301_vm10 = vcmask 64512  }
   0xc   :  { %v191_v41 = vsel %vm67_vm6, %v190_v29, %v189_v38  ;;  %240 = vmatpush.msra.mxu0 %v325_v32  ;;  %v65_v43 = vsel %vm64_vm5, %v63_v34, %v62_v42  ;;  %113 = vmatpush.msra.mxu1 %v108_v56  ;;  %v105_v59 = vld [vmem:[%s607_s3 + $0x60] sm:$0xff]  ;;  %v337_v60 = vld [vmem:[%s610_s5 + $0x78] sm:$0xff]  ;;  %v336_v62 = vld [vmem:[%s610_s5 + $0x70] sm:$0xff] }
   0xd   :  { %312 = vmatmul.msk.f32.vlgmr.msra.gmra.mxu3 %vm69_vm7, %v191_v41  ;;  %v68_v45 = vsel %vm67_vm6, %v66_v37, %v65_v43  ;;  %v104_v61 = vld [vmem:[%s607_s3 + $0x58] sm:$0xff]  ;;  %v335_v63 = vld [vmem:[%s610_s5 + $0x68] sm:$0xff]  ;;  %v103_v0 = vld [vmem:[%s607_s3 + $0x50] sm:$0xff] }
   0xe   :  { %241 = vmatpush.msra.mxu0 %v324_v39  ;;  %307 = vmatmul.msk.f32.vlgmr.msra.gmra.mxu2 %vm69_vm7, %v68_v45  ;;  %v334_v1 = vld [vmem:[%s610_s5 + $0x60] sm:$0xff]  ;;  %v102_v2 = vld [vmem:[%s607_s3 + $0x48] sm:$0xff]  ;;  %v333_v3 = vld [vmem:[%s610_s5 + $0x58] sm:$0xff] }
   0xf   :  { %114 = vmatpush.msra.mxu1 %v107_v57  ;;  %283 = vmatpush.msrb.mxu3 %v337_v60  ;;  %v101_v4 = vld [vmem:[%s607_s3 + $0x40] sm:$0xff]  ;;  %v100_v5 = vld [vmem:[%s607_s3 + $0x38] sm:$0xff]  ;;  %v99_v6 = vld [vmem:[%s607_s3 + $0x30] sm:$0xff] }
  0x10   :  { %242 = vmatpush.msra.mxu0 %v323_v44  ;;  %v98_v7 = vld [vmem:[%s607_s3 + $0x28] sm:$0xff]  ;;  %v97_v8 = vld [vmem:[%s607_s3 + $0x20] sm:$0xff]  ;;  %v96_v9 = vld [vmem:[%s607_s3 + $0x18] sm:$0xff] }
  0x11   :  { %115 = vmatpush.msra.mxu1 %v106_v58  ;;  %284 = vmatpush.msrb.mxu3 %v336_v62  ;;  %v341_v10 = vld [vmem:[%s608_s2 + $0x1] ss:$0 sm:$0xff]  ;;  %v95_v11 = vld [vmem:[%s607_s3 + $0x10] sm:$0xff]  ;;  %v342_v12 = vld [vmem:[%s608_s2] ss:$0 sm:$0xff]  ;;  %s347_s2 = smov 4  }
  0x12   :  { %243 = vmatpush.msra.mxu0 %v322_v46  ;;  %v94_v13 = vld [vmem:[%s607_s3 + $0x8] sm:$0xff]  ;;  %v93_v16 = vld [vmem:[%s607_s3] sm:$0xff]  ;;  %v332_v21 = vld [vmem:[%s610_s5 + $0x50] sm:$0xff] }
  0x13   :  { %116 = vmatpush.msra.mxu1 %v105_v59  ;;  %285 = vmatpush.msrb.mxu3 %v335_v63  ;;  %v331_v22 = vld [vmem:[%s610_s5 + $0x48] sm:$0xff]  ;;  %v330_v23 = vld [vmem:[%s610_s5 + $0x40] sm:$0xff]  ;;  %v141_v24 = vld [vmem:[%s610_s5 + $0x38] sm:$0xff] }
  0x14   :  { %244 = vmatpush.msra.mxu0 %v321_v47  ;;  %v140_v25 = vld [vmem:[%s610_s5 + $0x30] sm:$0xff]  ;;  %158 = vmatpush.msrb.mxu2 %v141_v24  ;;  %v139_v26 = vld [vmem:[%s610_s5 + $0x28] sm:$0xff]  ;;  %v138_v27 = vld [vmem:[%s610_s5 + $0x20] sm:$0xff] }
  0x15   :  { %117 = vmatpush.msra.mxu1 %v104_v61  ;;  %286 = vmatpush.msrb.mxu3 %v334_v1  ;;  %v137_v28 = vld [vmem:[%s610_s5 + $0x18] sm:$0xff]  ;;  %v136_v29 = vld [vmem:[%s610_s5 + $0x10] sm:$0xff]  ;;  %v135_v30 = vld [vmem:[%s610_s5 + $0x8] sm:$0xff] }
  0x16   :  { %245 = vmatpush.msra.mxu0 %v320_v48  ;;  %159 = vmatpush.msrb.mxu2 %v140_v25  ;;  %v134_v31 = vld [vmem:[%s610_s5] sm:$0xff] }
  0x17   :  { %118 = vmatpush.msra.mxu1 %v103_v0  ;;  %287 = vmatpush.msrb.mxu3 %v333_v3  ;;  %v343_v32 = vld [vmem:[%s609_s4 + $0x1] ss:$0 sm:$0xff]  ;;  %v344_v33 = vld [vmem:[%s609_s4] ss:$0 sm:$0xff] }
  0x18   :  { %246 = vmatpush.msra.mxu0 %v319_v49  ;;  %160 = vmatpush.msrb.mxu2 %v139_v26  ;;  %v345_v40 = vld [vmem:[%s611_s6 + $0x1] ss:$0 sm:$0xff]  ;;  %v346_v43 = vld [vmem:[%s611_s6] ss:$0 sm:$0xff] }
  0x19   :  { %119 = vmatpush.msra.mxu1 %v102_v2  ;;  %288 = vmatpush.msrb.mxu3 %v332_v21 }
  0x1a   :  { %247 = vmatpush.msra.mxu0 %v318_v50  ;;  %161 = vmatpush.msrb.mxu2 %v138_v27 }
  0x1b   :  { %120 = vmatpush.msra.mxu1 %v101_v4  ;;  %289 = vmatpush.msrb.mxu3 %v331_v22 }
  0x1c   :  { %248 = vmatpush.msra.mxu0 %v317_v51  ;;  %162 = vmatpush.msrb.mxu2 %v137_v28 }
  0x1d   :  { %121 = vmatpush.msra.mxu1 %v100_v5  ;;  %290 = vmatpush.msrb.mxu3 %v330_v23 }
  0x1e   :  { %249 = vmatpush.msra.mxu0 %v316_v52  ;;  %163 = vmatpush.msrb.mxu2 %v136_v29 }
  0x1f   :  { %122 = vmatpush.msra.mxu1 %v99_v6 }
  0x20   :  { %250 = vmatpush.msra.mxu0 %v315_v53  ;;  %164 = vmatpush.msrb.mxu2 %v135_v30 }
  0x21   :  { %123 = vmatpush.msra.mxu1 %v98_v7 }
  0x22   :  { %251 = vmatpush.msra.mxu0 %v314_v54  ;;  %165 = vmatpush.msrb.mxu2 %v134_v31 }
  0x23   :  { %124 = vmatpush.msra.mxu1 %v97_v8 }
  0x24   :  { %252 = vmatpush.msra.mxu0 %v313_v55 }
  0x25   :  { %125 = vmatpush.msra.mxu1 %v96_v9 }
  0x27   :  { %126 = vmatpush.msra.mxu1 %v95_v11 }
  0x29   :  { %127 = vmatpush.msra.mxu1 %v94_v13 }
  0x2b   :  { %128 = vmatpush.msra.mxu1 %v93_v16 }
  0x90   :  { %v211_v14 = vpop.f32.mrf.mxu3 }
  0x91   :  { %v212_v15 = vadd.f32 %v341_v10, %v211_v14  ;;  %v89_v17 = vpop.f32.mrf.mxu2 }
  0x92   :  { %v90_v19 = vadd.f32 %v342_v12, %v89_v17 }
  0x93   :  { %v214_v18 = vmax.f32 %v212_v15, 0.0 }
  0x94   :  { %v92_v20 = vmax.f32 %v90_v19, 0.0 }
  0x95   :  { %253 = vmatmul.f32.vlgmr.msra.gmra.mxu0 %v214_v18 }
  0x96   :  { %129 = vmatmul.f32.vlgmr.msra.gmra.mxu1 %v92_v20 }
 0x112   :  { %v254_v34 = vpop.f32.mrf.mxu0 }
 0x113   :  { %v255_v35 = vadd.f32 %v343_v32, %v254_v34  ;;  %v130_v36 = vpop.f32.mrf.mxu1 }
 0x114   :  { %v131_v38 = vadd.f32 %v344_v33, %v130_v36 }
 0x115   :  { %v257_v37 = vmax.f32 %v255_v35, 0.0 }
 0x116   :  { %v133_v39 = vmax.f32 %v131_v38, 0.0 }
 0x117   :  { %339 = vmatmul.msk.f32.vlgmr.msrb.gmra.mxu3 %vm146_vm8, %v257_v37 }
 0x118   :  { %308 = vmatmul.msk.f32.vlgmr.msrb.gmra.mxu2 %vm146_vm8, %v133_v39 }
 0x19a   :  { %v292_v41 = vpop.f32.mrf.mxu3 }
 0x19b   :  { %v293_v42 = vadd.f32 %v345_v40, %v292_v41  ;;  %v167_v44 = vpop.f32.mrf.mxu2 }
 0x19c   :  { %v168_v45 = vadd.f32 %v346_v43, %v167_v44 }
 0x19d   :  { %296 = vrot.lane.b32.xlu0 %v293_v42, %s347_s2 }
 0x20f   :  { %v297_v46 = vpop.permute.xlu0 %296 }
 0x210   :  { %v300_v47 = vsel %vm299_vm9, %v168_v45, %v297_v46 }
 0x211   :  { %302 = vst.msk [vmem:[%s612_s7] sm:$0xff] %vm301_vm10, %v300_v47 }

</bundles_post_ra>
